<compile_context>
chip_gen: v5e
topology: v5e:2x2
jax: 0.10.0
libtpu: 0.0.40
codegen_flags: <defaults>
</compile_context>

<pallas_src>
import math

import jax
import jax.numpy as jnp
from jax.experimental import pallas as pl
from jax.experimental.pallas import tpu as pltpu


def _round_up(x: int, m: int) -> int:
    return ((x + m - 1) // m) * m


def _graph_conv_kernel(apply_relu: bool):
    def kernel(adj_ref, x_ref, w_ref, b_ref, out_ref):
        # support = x @ W  (full x resident; tiny vs the adj matmul, kept f32)
        support = jnp.dot(x_ref[...], w_ref[...],
                          preferred_element_type=jnp.float32)
        # Dominant matmul: adj row tile (bf16) @ support (bf16) -> f32 accumulate.
        acc = jnp.dot(adj_ref[...], support.astype(jnp.bfloat16),
                      preferred_element_type=jnp.float32)
        acc = acc + b_ref[...]
        if apply_relu:
            acc = jnp.maximum(acc, 0.0)
        out_ref[...] = acc.astype(out_ref.dtype)

    return kernel


def graph_convolution(x, adj_bf16, w, b, *, apply_relu: bool, tm: int = 128):
    """One GraphConvolution layer: adj @ (x @ W) + b, optional fused ReLU.

    x:        [N_pad, F_in]   float32   (rows may be zero-padded)
    adj_bf16: [N_pad, N_pad]  bfloat16  (zero-padded rows/cols)
    w:        [F_in, F_out]   float32
    b:        [F_out]         float32
    returns   [N_pad, F_out_pad] float32  (feature dim padded to x128)
    """
    n_pad, f_in = x.shape
    f_out = w.shape[1]
    f_out_pad = _round_up(f_out, 128)          # lane-dense output stores

    tm_eff = min(tm, n_pad)
    assert n_pad % tm_eff == 0 and tm_eff % 8 == 0

    w_p = jnp.pad(w.astype(jnp.float32), ((0, 0), (0, f_out_pad - f_out)))
    b_p = jnp.pad(b.astype(jnp.float32), (0, f_out_pad - f_out)).reshape(1, f_out_pad)

    grid = (n_pad // tm_eff,)

    # Explicit VMEM budget (double-buffered adj row tile dominates at scale).
    vmem_bytes = (2 * tm_eff * n_pad * 2          # adj tile, bf16, 2 buffers
                  + 2 * n_pad * f_in * 4          # x (resident)
                  + 2 * f_in * f_out_pad * 4      # W
                  + 2 * f_out_pad * 4             # bias
                  + 2 * tm_eff * f_out_pad * 4    # out tile, 2 buffers
                  + n_pad * f_out_pad * 6         # support (f32 + bf16 copy)
                  + tm_eff * f_out_pad * 4)       # accumulator
    vmem_limit = int(min(max(2 * vmem_bytes, 16 * 1024 * 1024),
                         64 * 1024 * 1024))

    return pl.pallas_call(
        _graph_conv_kernel(apply_relu),
        out_shape=jax.ShapeDtypeStruct((n_pad, f_out_pad), jnp.float32),
        grid=grid,
        in_specs=[
            pl.BlockSpec((tm_eff, n_pad), lambda i: (i, 0)),    # adj row tile
            pl.BlockSpec((n_pad, f_in), lambda i: (0, 0)),      # x (resident)
            pl.BlockSpec((f_in, f_out_pad), lambda i: (0, 0)),  # W (resident)
            pl.BlockSpec((1, f_out_pad), lambda i: (0, 0)),     # bias
        ],
        out_specs=pl.BlockSpec((tm_eff, f_out_pad), lambda i: (i, 0)),
        compiler_params=pltpu.CompilerParams(
            dimension_semantics=("parallel",),
            vmem_limit_bytes=vmem_limit),
    )(adj_bf16, x, w_p, b_p)


def gcn_forward(x, adj, w1, b1, w2, b2, *, tm: int = 128):
    """Two-layer GCN forward (eval mode): relu(adj@(x@W1)+b1) -> adj@(h@W2)+b2."""
    n, _ = x.shape
    nhid = w1.shape[1]
    nclass = w2.shape[1]

    # Pad node count to a multiple of the row tile (with zero rows/cols of adj,
    # which contribute nothing to the real rows and are sliced off at the end).
    n_pad = _round_up(n, 8)
    tm_eff = min(tm, n_pad)
    n_pad = _round_up(n_pad, tm_eff)

    x_p = jnp.pad(x.astype(jnp.float32), ((0, n_pad - n), (0, 0)))
    adj_p = jnp.pad(adj.astype(jnp.float32),
                    ((0, n_pad - n), (0, n_pad - n))).astype(jnp.bfloat16)

    h = graph_convolution(x_p, adj_p, w1, b1, apply_relu=True, tm=tm_eff)
    h = h[:, :nhid]   # drop lane padding (no-op when nhid is already x128)
    # TODO(synk): training-mode dropout not implemented (eval mode = identity).
    out = graph_convolution(h, adj_p, w2, b2, apply_relu=False, tm=tm_eff)
    return out[:n, :nclass]


def gcn_reference(x, adj, w1, b1, w2, b2):
    """Pure-JAX f32 reference matching the PyTorch forward (eval mode)."""
    h = jnp.maximum(adj @ (x @ w1) + b1, 0.0)
    return adj @ (h @ w2) + b2


def _uniform_init(key, shape, stdv):
    # Matches GraphConvolution.reset_parameters: uniform_(-stdv, stdv),
    # stdv = 1 / sqrt(out_features).
    return jax.random.uniform(key, shape, jnp.float32, -stdv, stdv)


if __name__ == "__main__":
    # Small, deterministic example consistent with GCN(nfeat, nhid, nclass, dropout)
    N = 200        # number of graph nodes (exercises row padding to 256)
    NFEAT = 64
    NHID = 128
    NCLASS = 16
    DROPOUT = 0.5  # eval mode -> identity

    key = jax.random.PRNGKey(0)
    k_x, k_adj, kw1, kb1, kw2, kb2 = jax.random.split(key, 6)

    x = jax.random.normal(k_x, (N, NFEAT), jnp.float32)

    # Random symmetric adjacency with self loops, symmetrically normalized
    # (typical GCN preprocessing; kept dense since torch.spmm has no sparse
    # Pallas equivalent here).
    a = (jax.random.uniform(k_adj, (N, N)) < 0.05).astype(jnp.float32)
    a = jnp.maximum(a, a.T)
    a = jnp.maximum(a, jnp.eye(N, dtype=jnp.float32))
    dinv = 1.0 / jnp.sqrt(a.sum(axis=1))
    adj = a * dinv[:, None] * dinv[None, :]

    stdv1 = 1.0 / math.sqrt(NHID)
    w1 = _uniform_init(kw1, (NFEAT, NHID), stdv1)
    b1 = _uniform_init(kb1, (NHID,), stdv1)
    stdv2 = 1.0 / math.sqrt(NCLASS)
    w2 = _uniform_init(kw2, (NHID, NCLASS), stdv2)
    b2 = _uniform_init(kb2, (NCLASS,), stdv2)

    out = gcn_forward(x, adj, w1, b1, w2, b2)
    out = jax.block_until_ready(out)

    ref = gcn_reference(x, adj, w1, b1, w2, b2)
    assert out.shape == (N, NCLASS)
    # bf16 MXU operands on the adjacency matmuls -> tolerance loosened vs the
    # pure-f32 reference (measured error ~1e-3 at these scales).
    assert jnp.allclose(out, ref, atol=1e-2, rtol=1e-2), "mismatch vs reference"

    print("KERNEL_OK")
</pallas_src>

<mosaic_0001>
module attributes {stable_mosaic.version = 11 : i64} {
  func.func @kernel(%arg0: i32, %arg1: memref<128x256xbf16, #tpu.memory_space<vmem>>, %arg2: memref<256x64xf32, #tpu.memory_space<vmem>>, %arg3: memref<64x128xf32, #tpu.memory_space<vmem>>, %arg4: memref<1x128xf32, #tpu.memory_space<vmem>>, %arg5: memref<128x128xf32, #tpu.memory_space<vmem>>) attributes {dimension_semantics = [#tpu.dimension_semantics<parallel>], iteration_bounds = array<i64: 2>, scalar_prefetch = 0 : i64, scratch_operands = 0 : i64, tpu.core_type = #tpu.core_type<tc>, window_params = [{transform_indices = @transform_0, window_bounds = array<i64: 128, 256>}, {pipeline_mode = #tpu.pipeline_mode<synchronous>, transform_indices = @transform_1, window_bounds = array<i64: 256, 64>}, {pipeline_mode = #tpu.pipeline_mode<synchronous>, transform_indices = @transform_2, window_bounds = array<i64: 64, 128>}, {pipeline_mode = #tpu.pipeline_mode<synchronous>, transform_indices = @transform_3, window_bounds = array<i64: 1, 128>}, {transform_indices = @transform_4, window_bounds = array<i64: 128, 128>}]} {
    %c0 = arith.constant 0 : index
    %c0_0 = arith.constant 0 : index
    %0 = vector.load %arg2[%c0, %c0_0] : memref<256x64xf32, #tpu.memory_space<vmem>>, vector<256x64xf32>
    %c0_1 = arith.constant 0 : index
    %c0_2 = arith.constant 0 : index
    %1 = vector.load %arg3[%c0_1, %c0_2] : memref<64x128xf32, #tpu.memory_space<vmem>>, vector<64x128xf32>
    %cst = arith.constant dense<0.000000e+00> : vector<256x128xf32>
    %2 = tpu.matmul %0, %1, %cst {dimension_numbers = #tpu.dot_dimension_numbers<[1], [0], [0], [1], [0, 0, 1, 1], [], []>} : vector<256x64xf32>, vector<64x128xf32>, vector<256x128xf32> -> vector<256x128xf32>
    %c0_3 = arith.constant 0 : index
    %c0_4 = arith.constant 0 : index
    %3 = vector.load %arg1[%c0_3, %c0_4] : memref<128x256xbf16, #tpu.memory_space<vmem>>, vector<128x256xbf16>
    %4 = arith.truncf %2 : vector<256x128xf32> to vector<256x128xbf16>
    %cst_5 = arith.constant dense<0.000000e+00> : vector<128x128xf32>
    %5 = tpu.matmul %3, %4, %cst_5 {dimension_numbers = #tpu.dot_dimension_numbers<[1], [0], [0], [1], [0, 0, 1, 1], [], []>} : vector<128x256xbf16>, vector<256x128xbf16>, vector<128x128xf32> -> vector<128x128xf32>
    %c0_6 = arith.constant 0 : index
    %c0_7 = arith.constant 0 : index
    %6 = vector.load %arg4[%c0_6, %c0_7] : memref<1x128xf32, #tpu.memory_space<vmem>>, vector<1x128xf32>
    %7 = vector.broadcast %6 : vector<1x128xf32> to vector<128x128xf32>
    %8 = arith.addf %5, %7 : vector<128x128xf32>
    %cst_8 = arith.constant 0.000000e+00 : f32
    %9 = vector.broadcast %cst_8 : f32 to vector<128x128xf32>
    %10 = arith.maximumf %8, %9 : vector<128x128xf32>
    %c0_9 = arith.constant 0 : index
    %c0_10 = arith.constant 0 : index
    %11 = vector.load %arg5[%c0_9, %c0_10] : memref<128x128xf32, #tpu.memory_space<vmem>>, vector<128x128xf32>
    tpu.vector_store %arg5[%c0_9, %c0_10], %10 {strides = array<i32>} : memref<128x128xf32, #tpu.memory_space<vmem>>, vector<128x128xf32>,
    return
  }
  func.func @transform_0(%arg0: i32) -> (i32, i32) {
    %c0_i32 = arith.constant 0 : i32
    %c0_i32_0 = arith.constant 0 : i32
    return %arg0, %c0_i32 : i32, i32
  }
  func.func @transform_1(%arg0: i32) -> (i32, i32) {
    %c0_i32 = arith.constant 0 : i32
    %c0_i32_0 = arith.constant 0 : i32
    %c0_i32_1 = arith.constant 0 : i32
    return %c0_i32, %c0_i32_0 : i32, i32
  }
  func.func @transform_2(%arg0: i32) -> (i32, i32) {
    %c0_i32 = arith.constant 0 : i32
    %c0_i32_0 = arith.constant 0 : i32
    %c0_i32_1 = arith.constant 0 : i32
    return %c0_i32, %c0_i32_0 : i32, i32
  }
  func.func @transform_3(%arg0: i32) -> (i32, i32) {
    %c0_i32 = arith.constant 0 : i32
    %c0_i32_0 = arith.constant 0 : i32
    %c0_i32_1 = arith.constant 0 : i32
    return %c0_i32, %c0_i32_0 : i32, i32
  }
  func.func @transform_4(%arg0: i32) -> (i32, i32) {
    %c0_i32 = arith.constant 0 : i32
    %c0_i32_0 = arith.constant 0 : i32
    return %arg0, %c0_i32 : i32, i32
  }
}

</mosaic_0001>

<bundles_post_ra>
// kernel: tpu_custom_call.1
= control target key start
LH: loop header
LB: loop body
LE: loop exit
PB: predicated region body
PF: predicated region fallthrough
CT: control target
= control target key end

     0   :  { %9 = vsyncpa [#allocation3], 0  ;;  %s1373_s0 = inlined_call_operand.vmem [shape: bf16[256,256], index: 0, kind: input, shape index: {}]   ;;  %s1374_s1 = inlined_call_operand.vmem [shape: f32[256,64], index: 1, kind: input, shape index: {}]   ;;  %s1375_s2 = inlined_call_operand.vmem [shape: f32[64,128], index: 2, kind: input, shape index: {}]   ;;  %s1376_s3 = inlined_call_operand.vmem [shape: f32[1,128], index: 3, kind: input, shape index: {}]   ;;  %s1377_s4 = inlined_call_operand.hbm [shape: f32[256,128], index: 4, kind: output, shape index: {}]  }
   0x1   :  { %11 = vsyncpa [#allocation3 + $0x1], 0  ;;  %s1044_s15 = smov 0   ;;  %s1046_s16 = smov 0  }
   0x2   :  { %s1048_s17 = smov 0   ;;  %s1050_s18 = smov 0  }
   0x3 LB: > { %s1065_s19 = sadd.s32 4294967295, %s1015_s18   ;;  %s776_s20 = sadd.s32 4294967294, %s1015_s18   ;;  %s1015_s18 = sphi %s1050_s18, %s1383_s18   ;;  %s1011_s17 = sphi %s1048_s17, %s1382_s17   ;;  %s1007_s16 = sphi %s1046_s16, %s1381_s16   ;;  %s1003_s15 = sphi %s1044_s15, %s1380_s15  }
   0x4   : > { %s1069_s21 = sadd.s32 1, %s1015_s18   ;;  %s113_s22 = sadd.s32 1, %s1011_s17 }
   0x5   : > { %s110_s23 = ssub.s32 %s1015_s18, %s1069_s21  ;;  %p123_p0 = scmp.ne.s32.totalorder %s1011_s17, %s1007_s16 }
   0x6   : > { %p111_p1 = scmp.eq.s32.totalorder %s110_s23, 0  ;;  %p124_p2 = scmp.eq.s32.totalorder %s1065_s19, 1 }
   0x7   : > { %p129_p3 = scmp.ne.s32.totalorder %s1007_s16, %s1003_s15  ;;  %p130_p4 = scmp.eq.s32.totalorder %s776_s20, 1 }
   0x8   : > { %s1080_s24 = scalar_select %p111_p1, %s1011_s17, %s113_s22  }
   0x9   : > { %p1082_p5 = por %p124_p2, %p123_p0  ;;  %p1086_p6 = por %p130_p4, %p129_p3 }
   0xa   : > { %p779_p7 = scmp.ge.s32.totalorder %s1015_s18, 1  ;;  %p167_p8 = scmp.lt.s32.totalorder %s1015_s18, 3 }
   0xc   : > { %p168_p9 = pnand %p779_p7, %p167_p8 }
   0xd   : > { %s781_s13 = sshll.u32 (!%p168_p9), %s1065_s19, 4  ;;  %s191_s29 = sand.u32 (!%p168_p9), 1, %s1007_s16  }
   0xe   : > { %171 = sbr.rel (%p168_p9) target bundleno = 572 (0x23c), region = 36  ;;  %p195_p10 = scmp.lt.s32.totalorder (!%p168_p9), %s781_s13, 31 }
   0xf   : > { %s780_s30 = sshll.u32 (!%p168_p9), %s191_s29, 7  ;;  %s902_s6 = sshll.u32 (!%p168_p9), %s1065_s19, 7 }
  0x10   : > { %s1306_s5 = scalar_lea.vmem (!%p168_p9), [#allocation2], %s780_s30  ;;  %s710_s9 = scalar_lea.hbm (!%p168_p9), %s1377_s4, %s902_s6 }
  0x11   : > { %s711_s10 = sshll.u32 (!%p168_p9), %s1306_s5, 4  ;;  %s713_s11 = sshll.u32 (!%p168_p9), %s710_s9, 4  ;;  %s712_s10 = int_to_ptr.vmem [resolvable:$true] %s711_s10  ;;  %s714_s11 = int_to_ptr.hbm [resolvable:$true] %s713_s11 }
  0x12   : > { %s699_s19 = scalar_lea.sflag (!%p168_p9), [#allocation3], %s191_s29  ;;  %s967_s12 = sshra.s32 (!%p168_p9), %s714_s11, 4  ;;  %s968_s12 = int_to_ptr.hbm [resolvable:$true] %s967_s12 }
  0x13   : > { %v241_v0 = vld [vmem:[%s1375_s2 + $0x38] sm:$0xff]  ;;  %v240_v1 = vld [vmem:[%s1375_s2 + $0x30] sm:$0xff]  ;;  %v239_v2 = vld [vmem:[%s1375_s2 + $0x28] sm:$0xff]  ;;  %vm242_vm0 = vcmask 523264   ;;  %s1385_s13 = smov (!%p195_p10, %s781_s13), 31  ;;  %s973_s22 = scalar_lea.hbm %s1377_s4, 256 }
  0x14   : > { %347 = vmatpush.msra.mxu0 %v241_v0  ;;  %903 = vmatpush.msra.mxu3 %v241_v0  ;;  %v238_v3 = vld [vmem:[%s1375_s2 + $0x20] sm:$0xff]  ;;  %v237_v4 = vld [vmem:[%s1375_s2 + $0x18] sm:$0xff]  ;;  %v236_v5 = vld [vmem:[%s1375_s2 + $0x10] sm:$0xff]  ;;  %s885_s14 = sshll.u32 %s1385_s13, 3  ;;  %s969_s13 = scalar_lea.hbm %s968_s12, 128 }
  0x15   : > { %v235_v6 = vld [vmem:[%s1375_s2 + $0x8] sm:$0xff]  ;;  %v234_v7 = vld [vmem:[%s1375_s2] sm:$0xff]  ;;  %v220_v11 = vld [vmem:[%s1374_s1 + $0x90] sm:$0xff]  ;;  %s1259_s23 = scalar_lea.vmem %s1373_s0, %s885_s14  ;;  %p970_p11 = scmp.ne.s32.totalorder %s968_s12, %s969_s13 }
  0x16   : > { %348 = vmatpush.msra.mxu0 %v240_v1  ;;  %904 = vmatpush.msra.mxu3 %v240_v1  ;;  %v202_v8 = vld [vmem:[%s1374_s1] sm:$0xff]  ;;  %v219_v9 = vld [vmem:[%s1374_s1 + $0x88] sm:$0xff]  ;;  %v204_v12 = vld [vmem:[%s1374_s1 + $0x10] sm:$0xff]  ;;  %p974_p0 = scmp.lt.s32.totalorder %s968_s12, %s1377_s4  ;;  %p975_p1 = scmp.lt.s32.totalorder %s973_s22, %s969_s13 }
  0x17   : > { %v203_v10 = vld [vmem:[%s1374_s1 + $0x8] sm:$0xff]  ;;  %v221_v13 = vld [vmem:[%s1374_s1 + $0x98] sm:$0xff]  ;;  %v222_v15 = vld [vmem:[%s1374_s1 + $0xa0] sm:$0xff]  ;;  %p971_p12 = pnand %p970_p11, %p1082_p5 }
  0x18   : > { %349 = vmatpush.msra.mxu0 %v239_v2  ;;  %905 = vmatpush.msra.mxu3 %v239_v2  ;;  %v205_v14 = vld [vmem:[%s1374_s1 + $0x18] sm:$0xff]  ;;  %v206_v16 = vld [vmem:[%s1374_s1 + $0x20] sm:$0xff]  ;;  %v223_v17 = vld [vmem:[%s1374_s1 + $0xa8] sm:$0xff]  ;;  %p976_p2 = por %p975_p1, %p974_p0 }
  0x19   : > { %v207_v18 = vld [vmem:[%s1374_s1 + $0x28] sm:$0xff]  ;;  %v224_v19 = vld [vmem:[%s1374_s1 + $0xb0] sm:$0xff]  ;;  %v225_v21 = vld [vmem:[%s1374_s1 + $0xb8] sm:$0xff]  ;;  %p972_p13 = pneg %p971_p12 }
  0x1a   : > { %350 = vmatpush.msra.mxu0 %v238_v3  ;;  %906 = vmatpush.msra.mxu3 %v238_v3  ;;  %v208_v20 = vld [vmem:[%s1374_s1 + $0x30] sm:$0xff]  ;;  %v209_v22 = vld [vmem:[%s1374_s1 + $0x38] sm:$0xff]  ;;  %v226_v23 = vld [vmem:[%s1374_s1 + $0xc0] sm:$0xff] }
  0x1b   : > { %v210_v24 = vld [vmem:[%s1374_s1 + $0x40] sm:$0xff]  ;;  %v227_v25 = vld [vmem:[%s1374_s1 + $0xc8] sm:$0xff]  ;;  %v228_v27 = vld [vmem:[%s1374_s1 + $0xd0] sm:$0xff]  ;;  %p977_p3 = pnand %p976_p2, %p972_p13 }
  0x1c   : > { %351 = vmatpush.msra.mxu0 %v237_v4  ;;  %907 = vmatpush.msra.mxu3 %v237_v4  ;;  %v211_v26 = vld [vmem:[%s1374_s1 + $0x48] sm:$0xff]  ;;  %v212_v28 = vld [vmem:[%s1374_s1 + $0x50] sm:$0xff]  ;;  %v229_v29 = vld [vmem:[%s1374_s1 + $0xd8] sm:$0xff] }
  0x1d   : > { %v213_v30 = vld [vmem:[%s1374_s1 + $0x58] sm:$0xff]  ;;  %v230_v31 = vld [vmem:[%s1374_s1 + $0xe0] sm:$0xff]  ;;  %v231_v33 = vld [vmem:[%s1374_s1 + $0xe8] sm:$0xff] }
  0x1e   : > { %352 = vmatpush.msra.mxu0 %v236_v5  ;;  %908 = vmatpush.msra.mxu3 %v236_v5  ;;  %v214_v32 = vld [vmem:[%s1374_s1 + $0x60] sm:$0xff]  ;;  %v215_v34 = vld [vmem:[%s1374_s1 + $0x68] sm:$0xff]  ;;  %v232_v35 = vld [vmem:[%s1374_s1 + $0xf0] sm:$0xff] }
  0x1f   : > { %v216_v36 = vld [vmem:[%s1374_s1 + $0x70] sm:$0xff]  ;;  %v233_v37 = vld [vmem:[%s1374_s1 + $0xf8] sm:$0xff]  ;;  %v218_v40 = vld [vmem:[%s1374_s1 + $0x80] sm:$0xff] }
  0x20   : > { %353 = vmatpush.msra.mxu0 %v235_v6  ;;  %909 = vmatpush.msra.mxu3 %v235_v6  ;;  %v217_v38 = vld [vmem:[%s1374_s1 + $0x78] sm:$0xff] }
  0x22   : > { %354 = vmatpush.msra.mxu0 %v234_v7  ;;  %910 = vmatpush.msra.mxu3 %v234_v7 }
  0x23   : > { %784 = vmatmul.msk.f32.vlgmr.msra.gmra.mxu0 %vm242_vm0, %v202_v8  ;;  %801 = vmatmul.msk.f32.vlgmr.msra.gmra.mxu3 %vm242_vm0, %v219_v9 }
  0x2b   : > { %785 = vmatmul.msk.f32.gmra.mxu0 %vm242_vm0, %v203_v10  ;;  %802 = vmatmul.msk.f32.gmra.mxu3 %vm242_vm0, %v220_v11 }
  0x33   : > { %786 = vmatmul.msk.f32.gmra.mxu0 %vm242_vm0, %v204_v12  ;;  %803 = vmatmul.msk.f32.gmra.mxu3 %vm242_vm0, %v221_v13 }
  0x3b   : > { %787 = vmatmul.msk.f32.gmra.mxu0 %vm242_vm0, %v205_v14  ;;  %804 = vmatmul.msk.f32.gmra.mxu3 %vm242_vm0, %v222_v15 }
  0x43   : > { %788 = vmatmul.msk.f32.gmra.mxu0 %vm242_vm0, %v206_v16  ;;  %805 = vmatmul.msk.f32.gmra.mxu3 %vm242_vm0, %v223_v17 }
  0x4b   : > { %789 = vmatmul.msk.f32.gmra.mxu0 %vm242_vm0, %v207_v18  ;;  %806 = vmatmul.msk.f32.gmra.mxu3 %vm242_vm0, %v224_v19 }
  0x53   : > { %790 = vmatmul.msk.f32.gmra.mxu0 %vm242_vm0, %v208_v20  ;;  %807 = vmatmul.msk.f32.gmra.mxu3 %vm242_vm0, %v225_v21 }
  0x5b   : > { %791 = vmatmul.msk.f32.gmra.mxu0 %vm242_vm0, %v209_v22  ;;  %808 = vmatmul.msk.f32.gmra.mxu3 %vm242_vm0, %v226_v23  ;;  %v886_v23 = vld [vmem:[%s1259_s23 + $0x4] sm:$0xf] }
  0x63   : > { %792 = vmatmul.msk.f32.gmra.mxu0 %vm242_vm0, %v210_v24  ;;  %809 = vmatmul.msk.f32.gmra.mxu3 %vm242_vm0, %v227_v25  ;;  %v820_v24 = vld [vmem:[%s1259_s23 + $0x8] sm:$0xf0] }
  0x6b   : > { %793 = vmatmul.msk.f32.gmra.mxu0 %vm242_vm0, %v211_v26  ;;  %810 = vmatmul.msk.f32.gmra.mxu3 %vm242_vm0, %v228_v27  ;;  %v818_v26 = vld [vmem:[%s1259_s23] sm:$0xf]  ;;  %v887_v27 = vld [vmem:[%s1259_s23 + $0x4] sm:$0xf0] }
  0x73   : > { %794 = vmatmul.msk.f32.gmra.mxu0 %vm242_vm0, %v212_v28  ;;  %811 = vmatmul.msk.f32.gmra.mxu3 %vm242_vm0, %v229_v29  ;;  %v823_v28 = vor.u32 %v886_v23, %v820_v24  ;;  %v819_v29 = vor.u32 %v887_v27, %v818_v26 }
  0x7b   : > { %795 = vmatmul.msk.f32.gmra.mxu0 %vm242_vm0, %v213_v30  ;;  %812 = vmatmul.msk.f32.gmra.mxu3 %vm242_vm0, %v230_v31  ;;  %v888_v30 = vld [vmem:[%s1259_s23 + $0x14] sm:$0xf]  ;;  %v828_v31 = vld [vmem:[%s1259_s23 + $0x18] sm:$0xf0] }
  0x83   : > { %796 = vmatmul.msk.f32.gmra.mxu0 %vm242_vm0, %v214_v32  ;;  %813 = vmatmul.msk.f32.gmra.mxu3 %vm242_vm0, %v231_v33  ;;  %v826_v32 = vld [vmem:[%s1259_s23 + $0x10] sm:$0xf]  ;;  %v889_v33 = vld [vmem:[%s1259_s23 + $0x14] sm:$0xf0] }
  0x8b   : > { %797 = vmatmul.msk.f32.gmra.mxu0 %vm242_vm0, %v215_v34  ;;  %814 = vmatmul.msk.f32.gmra.mxu3 %vm242_vm0, %v232_v35  ;;  %v831_v34 = vor.u32 %v888_v30, %v828_v31  ;;  %v827_v35 = vor.u32 %v889_v33, %v826_v32 }
  0x93   : > { %798 = vmatmul.msk.f32.gmra.mxu0 %vm242_vm0, %v216_v36  ;;  %815 = vmatmul.msk.f32.gmra.mxu3 %vm242_vm0, %v233_v37  ;;  %v890_v36 = vld [vmem:[%s1259_s23 + $0x24] sm:$0xf]  ;;  %v836_v37 = vld [vmem:[%s1259_s23 + $0x28] sm:$0xf0] }
  0x9b   : > { %799 = vmatmul.msk.f32.gmra.mxu0 %vm242_vm0, %v217_v38  ;;  %v834_v38 = vld [vmem:[%s1259_s23 + $0x20] sm:$0xf] }
  0xa0   : > { %v1240_v39 = vpop.f32.mrf.mxu0 }
  0xa3   : > { %800 = vmatmul.msk.f32.gmra.mxu0 %vm242_vm0, %v218_v40  ;;  %v839_v40 = vor.u32 %v890_v36, %v836_v37 }
  0xa6   : > { %v1246_v41 = vpop.f32.mrf.mxu3 }
  0xa8   : > { %v1248_v42 = vpop.f32.mrf.mxu0 }
  0xa9   : > { %v468_v43 = vpack.c.bf16 %v1248_v42, %v1240_v39  ;;  %v891_v39 = vld [vmem:[%s1259_s23 + $0x24] sm:$0xf0]  ;;  %v892_v42 = vld [vmem:[%s1259_s23 + $0x34] sm:$0xf] }
  0xae   : > { %v410_v44 = vpop.f32.mrf.mxu3 }
  0xb0   : > { %v1252_v45 = vpop.f32.mrf.mxu0 }
  0xb6   : > { %v413_v46 = vpop.f32.mrf.mxu3 }
  0xb7   : > { %v477_v47 = vpack.c.bf16 %v413_v46, %v410_v44  ;;  %v842_v44 = vld [vmem:[%s1259_s23 + $0x30] sm:$0xf] }
  0xb8   : > { %v365_v48 = vpop.f32.mrf.mxu0 }
  0xb9   : > { %v469_v49 = vpack.c.bf16 %v365_v48, %v1252_v45  ;;  %v893_v45 = vld [vmem:[%s1259_s23 + $0x34] sm:$0xf0]  ;;  %v894_v48 = vld [vmem:[%s1259_s23 + $0x44] sm:$0xf] }
  0xbe   : > { %v416_v50 = vpop.f32.mrf.mxu3 }
  0xc0   : > { %v368_v51 = vpop.f32.mrf.mxu0 }
  0xc6   : > { %v419_v52 = vpop.f32.mrf.mxu3 }
  0xc7   : > { %v478_v53 = vpack.c.bf16 %v419_v52, %v416_v50  ;;  %v850_v50 = vld [vmem:[%s1259_s23 + $0x40] sm:$0xf] }
  0xc8   : > { %v371_v54 = vpop.f32.mrf.mxu0 }
  0xc9   : > { %v470_v55 = vpack.c.bf16 %v371_v54, %v368_v51  ;;  %v895_v51 = vld [vmem:[%s1259_s23 + $0x44] sm:$0xf0]  ;;  %v896_v54 = vld [vmem:[%s1259_s23 + $0x54] sm:$0xf] }
  0xce   : > { %v422_v56 = vpop.f32.mrf.mxu3 }
  0xd0   : > { %v374_v57 = vpop.f32.mrf.mxu0 }
  0xd6   : > { %v425_v58 = vpop.f32.mrf.mxu3 }
  0xd7   : > { %v479_v59 = vpack.c.bf16 %v425_v58, %v422_v56  ;;  %v858_v56 = vld [vmem:[%s1259_s23 + $0x50] sm:$0xf] }
  0xd8   : > { %v377_v60 = vpop.f32.mrf.mxu0 }
  0xd9   : > { %v471_v61 = vpack.c.bf16 %v377_v60, %v374_v57  ;;  %v897_v57 = vld [vmem:[%s1259_s23 + $0x54] sm:$0xf0]  ;;  %v898_v60 = vld [vmem:[%s1259_s23 + $0x64] sm:$0xf] }
  0xde   : > { %v428_v62 = vpop.f32.mrf.mxu3 }
  0xe0   : > { %v380_v63 = vpop.f32.mrf.mxu0 }
  0xe6   : > { %v431_v0 = vpop.f32.mrf.mxu3 }
  0xe7   : > { %v480_v20 = vpack.c.bf16 %v431_v0, %v428_v62  ;;  %v866_v62 = vld [vmem:[%s1259_s23 + $0x60] sm:$0xf] }
  0xe8   : > { %v383_v1 = vpop.f32.mrf.mxu0 }
  0xe9   : > { %v472_v21 = vpack.c.bf16 %v383_v1, %v380_v63  ;;  %v899_v63 = vld [vmem:[%s1259_s23 + $0x64] sm:$0xf0] }
  0xea   : > { %v867_v1 = vor.u32 %v899_v63, %v866_v62 }
  0xee   : > { %v434_v2 = vpop.f32.mrf.mxu3 }
  0xf0   : > { %v386_v3 = vpop.f32.mrf.mxu0 }
  0xf6   : > { %v437_v4 = vpop.f32.mrf.mxu3 }
  0xf7   : > { %v481_v18 = vpack.c.bf16 %v437_v4, %v434_v2  ;;  %v900_v2 = vld [vmem:[%s1259_s23 + $0x74] sm:$0xf]  ;;  %v874_v4 = vld [vmem:[%s1259_s23 + $0x70] sm:$0xf] }
  0xf8   : > { %v389_v5 = vpop.f32.mrf.mxu0 }
  0xf9   : > { %v473_v19 = vpack.c.bf16 %v389_v5, %v386_v3  ;;  %v876_v3 = vld [vmem:[%s1259_s23 + $0x78] sm:$0xf0]  ;;  %v901_v5 = vld [vmem:[%s1259_s23 + $0x74] sm:$0xf0] }
  0xfe   : > { %v440_v6 = vpop.f32.mrf.mxu3 }
 0x100   : > { %v392_v7 = vpop.f32.mrf.mxu0 }
 0x106   : > { %v443_v8 = vpop.f32.mrf.mxu3 }
 0x107   : > { %v482_v16 = vpack.c.bf16 %v443_v8, %v440_v6  ;;  %v879_v6 = vor.u32 %v900_v2, %v876_v3  ;;  %v1300_v8 = vld [vmem:[%s1376_s3] ss:$0 sm:$0xff] }
 0x108   : > { %v395_v9 = vpop.f32.mrf.mxu0 }
 0x109   : > { %v474_v17 = vpack.c.bf16 %v395_v9, %v392_v7  ;;  %v875_v7 = vor.u32 %v901_v5, %v874_v4 }
 0x10e   : > { %v446_v10 = vpop.f32.mrf.mxu3 }
 0x110   : > { %v398_v11 = vpop.f32.mrf.mxu0 }
 0x116   : > { %v449_v12 = vpop.f32.mrf.mxu3 }
 0x117   : > { %v483_v13 = vpack.c.bf16 %v449_v12, %v446_v10 }
 0x118   : > { %v401_v14 = vpop.f32.mrf.mxu0 }
 0x119   : > { %617 = vmatpush.bf16.msra.mxu2 %v483_v13  ;;  %v475_v15 = vpack.c.bf16 %v401_v14, %v398_v11 }
 0x11b   : > { %568 = vmatpush.bf16.msra.mxu1 %v475_v15 }
 0x11d   : > { %618 = vmatpush.bf16.msra.mxu2 %v482_v16 }
 0x11f   : > { %569 = vmatpush.bf16.msra.mxu1 %v474_v17 }
 0x120   : > { %v404_v22 = vpop.f32.mrf.mxu0 }
 0x121   : > { %619 = vmatpush.bf16.msra.mxu2 %v481_v18  ;;  %v476_v25 = vpack.c.bf16 %v1246_v41, %v404_v22  ;;  %v835_v41 = vor.u32 %v891_v39, %v834_v38 }
 0x123   : > { %570 = vmatpush.bf16.msra.mxu1 %v473_v19 }
 0x125   : > { %620 = vmatpush.bf16.msra.mxu2 %v480_v20 }
 0x127   : > { %571 = vmatpush.bf16.msra.mxu1 %v472_v21 }
 0x129   : > { %621 = vmatpush.bf16.msra.mxu2 %v479_v59  ;;  %v859_v59 = vor.u32 %v897_v57, %v858_v56 }
 0x12b   : > { %572 = vmatpush.bf16.msra.mxu1 %v471_v61  ;;  %v868_v61 = vld [vmem:[%s1259_s23 + $0x68] sm:$0xf0] }
 0x12c   : > { %v871_v0 = vor.u32 %v898_v60, %v868_v61 }
 0x12d   : > { %622 = vmatpush.bf16.msra.mxu2 %v478_v53  ;;  %v851_v53 = vor.u32 %v895_v51, %v850_v50 }
 0x12f   : > { %573 = vmatpush.bf16.msra.mxu1 %v470_v55  ;;  %v860_v55 = vld [vmem:[%s1259_s23 + $0x58] sm:$0xf0] }
 0x130   : > { %v863_v58 = vor.u32 %v896_v54, %v860_v55 }
 0x131   : > { %623 = vmatpush.bf16.msra.mxu2 %v477_v47  ;;  %v843_v47 = vor.u32 %v893_v45, %v842_v44 }
 0x133   : > { %574 = vmatpush.bf16.msra.mxu1 %v469_v49  ;;  %v852_v49 = vld [vmem:[%s1259_s23 + $0x48] sm:$0xf0] }
 0x134   : > { %v855_v52 = vor.u32 %v894_v48, %v852_v49 }
 0x135   : > { %624 = vmatpush.bf16.msra.mxu2 %v476_v25 }
 0x137   : > { %575 = vmatpush.bf16.msra.mxu1 %v468_v43  ;;  %v844_v43 = vld [vmem:[%s1259_s23 + $0x38] sm:$0xf0] }
 0x138   : > { %625 = vmatmul.bf16.vlgmr.msra.gmra.mxu2 %v823_v28  ;;  %v847_v46 = vor.u32 %v892_v42, %v844_v43 }
 0x13a   : > { %576 = vmatmul.bf16.vlgmr.msra.gmra.mxu1 %v819_v29 }
 0x148   : > { %630 = vmatmul.bf16.gmra.mxu2 %v831_v34 }
 0x14a   : > { %581 = vmatmul.bf16.gmra.mxu1 %v827_v35 }
 0x158   : > { %635 = vmatmul.bf16.gmra.mxu2 %v839_v40 }
 0x15a   : > { %586 = vmatmul.bf16.gmra.mxu1 %v835_v41 }
 0x168   : > { %640 = vmatmul.bf16.gmra.mxu2 %v847_v46 }
 0x16a   : > { %591 = vmatmul.bf16.gmra.mxu1 %v843_v47 }
 0x178   : > { %645 = vmatmul.bf16.gmra.mxu2 %v855_v52 }
 0x17a   : > { %596 = vmatmul.bf16.gmra.mxu1 %v851_v53 }
 0x188   : > { %650 = vmatmul.bf16.gmra.mxu2 %v863_v58 }
 0x18a   : > { %601 = vmatmul.bf16.gmra.mxu1 %v859_v59 }
 0x198   : > { %655 = vmatmul.bf16.gmra.mxu2 %v871_v0 }
 0x19a   : > { %606 = vmatmul.bf16.gmra.mxu1 %v867_v1 }
 0x1a8   : > { %660 = vmatmul.bf16.gmra.mxu2 %v879_v6 }
 0x1aa   : > { %611 = vmatmul.bf16.gmra.mxu1 %v875_v7 }
 0x1b7   : > { %v577_v9 = vpop.f32.mrf.mxu1 }
 0x1b8   : > { %v578_v10 = vadd.f32 %v1300_v8, %v577_v9 }
 0x1bb   : > { %v626_v11 = vpop.f32.mrf.mxu2 }
 0x1bc   : > { %v627_v12 = vadd.f32 %v626_v11, %v578_v10 }
 0x1be   : > { %v666_v13 = vmax.f32 %v627_v12, 0.0 }
 0x1bf   : > { %v579_v14 = vpop.f32.mrf.mxu1 }
 0x1c0   : > { %682 = vst [vmem:[%s1306_s5] sm:$0xff] %v666_v13  ;;  %v580_v15 = vadd.f32 %v1300_v8, %v579_v14 }
 0x1c3   : > { %v628_v16 = vpop.f32.mrf.mxu2 }
 0x1c4   : > { %v629_v17 = vadd.f32 %v628_v16, %v580_v15 }
 0x1c6   : > { %v667_v18 = vmax.f32 %v629_v17, 0.0 }
 0x1c7   : > { %v582_v19 = vpop.f32.mrf.mxu1 }
 0x1c8   : > { %683 = vst [vmem:[%s1306_s5 + $0x8] sm:$0xff] %v667_v18  ;;  %v583_v20 = vadd.f32 %v1300_v8, %v582_v19 }
 0x1cb   : > { %v631_v21 = vpop.f32.mrf.mxu2 }
 0x1cc   : > { %v632_v22 = vadd.f32 %v631_v21, %v583_v20 }
 0x1ce   : > { %v668_v23 = vmax.f32 %v632_v22, 0.0 }
 0x1cf   : > { %v584_v24 = vpop.f32.mrf.mxu1 }
 0x1d0   : > { %684 = vst [vmem:[%s1306_s5 + $0x10] sm:$0xff] %v668_v23  ;;  %v585_v25 = vadd.f32 %v1300_v8, %v584_v24 }
 0x1d3   : > { %v633_v26 = vpop.f32.mrf.mxu2 }
 0x1d4   : > { %v634_v27 = vadd.f32 %v633_v26, %v585_v25 }
 0x1d6   : > { %v669_v28 = vmax.f32 %v634_v27, 0.0 }
 0x1d7   : > { %v587_v29 = vpop.f32.mrf.mxu1 }
 0x1d8   : > { %685 = vst [vmem:[%s1306_s5 + $0x18] sm:$0xff] %v669_v28  ;;  %v588_v30 = vadd.f32 %v1300_v8, %v587_v29 }
 0x1db   : > { %v636_v31 = vpop.f32.mrf.mxu2 }
 0x1dc   : > { %v637_v32 = vadd.f32 %v636_v31, %v588_v30 }
 0x1de   : > { %v670_v33 = vmax.f32 %v637_v32, 0.0 }
 0x1df   : > { %v589_v34 = vpop.f32.mrf.mxu1 }
 0x1e0   : > { %686 = vst [vmem:[%s1306_s5 + $0x20] sm:$0xff] %v670_v33  ;;  %v590_v35 = vadd.f32 %v1300_v8, %v589_v34 }
 0x1e3   : > { %v638_v36 = vpop.f32.mrf.mxu2 }
 0x1e4   : > { %v639_v37 = vadd.f32 %v638_v36, %v590_v35 }
 0x1e6   : > { %v671_v38 = vmax.f32 %v639_v37, 0.0 }
 0x1e7   : > { %v592_v39 = vpop.f32.mrf.mxu1 }
 0x1e8   : > { %687 = vst [vmem:[%s1306_s5 + $0x28] sm:$0xff] %v671_v38  ;;  %v593_v40 = vadd.f32 %v1300_v8, %v592_v39 }
 0x1eb   : > { %v641_v41 = vpop.f32.mrf.mxu2 }
 0x1ec   : > { %v642_v42 = vadd.f32 %v641_v41, %v593_v40 }
 0x1ee   : > { %v672_v43 = vmax.f32 %v642_v42, 0.0 }
 0x1ef   : > { %v594_v44 = vpop.f32.mrf.mxu1 }
 0x1f0   : > { %688 = vst [vmem:[%s1306_s5 + $0x30] sm:$0xff] %v672_v43  ;;  %v595_v45 = vadd.f32 %v1300_v8, %v594_v44 }
 0x1f3   : > { %v643_v46 = vpop.f32.mrf.mxu2 }
 0x1f4   : > { %v644_v47 = vadd.f32 %v643_v46, %v595_v45 }
 0x1f6   : > { %v673_v48 = vmax.f32 %v644_v47, 0.0 }
 0x1f7   : > { %v597_v49 = vpop.f32.mrf.mxu1 }
 0x1f8   : > { %689 = vst [vmem:[%s1306_s5 + $0x38] sm:$0xff] %v673_v48  ;;  %v598_v50 = vadd.f32 %v1300_v8, %v597_v49 }
 0x1fb   : > { %v646_v51 = vpop.f32.mrf.mxu2 }
 0x1fc   : > { %v647_v52 = vadd.f32 %v646_v51, %v598_v50 }
 0x1fe   : > { %v674_v53 = vmax.f32 %v647_v52, 0.0 }
 0x1ff   : > { %v599_v54 = vpop.f32.mrf.mxu1 }
 0x200   : > { %690 = vst [vmem:[%s1306_s5 + $0x40] sm:$0xff] %v674_v53  ;;  %v600_v55 = vadd.f32 %v1300_v8, %v599_v54 }
 0x203   : > { %v648_v56 = vpop.f32.mrf.mxu2 }
 0x204   : > { %v649_v57 = vadd.f32 %v648_v56, %v600_v55 }
 0x206   : > { %v675_v58 = vmax.f32 %v649_v57, 0.0 }
 0x207   : > { %v602_v59 = vpop.f32.mrf.mxu1 }
 0x208   : > { %691 = vst [vmem:[%s1306_s5 + $0x48] sm:$0xff] %v675_v58  ;;  %v603_v60 = vadd.f32 %v1300_v8, %v602_v59 }
 0x20b   : > { %v651_v61 = vpop.f32.mrf.mxu2 }
 0x20c   : > { %v652_v62 = vadd.f32 %v651_v61, %v603_v60 }
 0x20e   : > { %v676_v63 = vmax.f32 %v652_v62, 0.0 }
 0x20f   : > { %v604_v0 = vpop.f32.mrf.mxu1 }
 0x210   : > { %692 = vst [vmem:[%s1306_s5 + $0x50] sm:$0xff] %v676_v63  ;;  %v605_v1 = vadd.f32 %v1300_v8, %v604_v0 }
 0x213   : > { %v653_v2 = vpop.f32.mrf.mxu2 }
 0x214   : > { %v654_v3 = vadd.f32 %v653_v2, %v605_v1 }
 0x216   : > { %v677_v4 = vmax.f32 %v654_v3, 0.0 }
 0x217   : > { %v607_v5 = vpop.f32.mrf.mxu1 }
 0x218   : > { %693 = vst [vmem:[%s1306_s5 + $0x58] sm:$0xff] %v677_v4  ;;  %v608_v6 = vadd.f32 %v1300_v8, %v607_v5 }
 0x21b   : > { %v656_v7 = vpop.f32.mrf.mxu2 }
 0x21c   : > { %v657_v9 = vadd.f32 %v656_v7, %v608_v6 }
 0x21e   : > { %v678_v10 = vmax.f32 %v657_v9, 0.0 }
 0x21f   : > { %v609_v11 = vpop.f32.mrf.mxu1 }
 0x220   : > { %694 = vst [vmem:[%s1306_s5 + $0x60] sm:$0xff] %v678_v10  ;;  %v610_v12 = vadd.f32 %v1300_v8, %v609_v11 }
 0x223   : > { %v658_v13 = vpop.f32.mrf.mxu2 }
 0x224   : > { %v659_v14 = vadd.f32 %v658_v13, %v610_v12 }
 0x226   : > { %v679_v15 = vmax.f32 %v659_v14, 0.0 }
 0x227   : > { %v612_v16 = vpop.f32.mrf.mxu1 }
 0x228   : > { %695 = vst [vmem:[%s1306_s5 + $0x68] sm:$0xff] %v679_v15  ;;  %v613_v17 = vadd.f32 %v1300_v8, %v612_v16 }
 0x22b   : > { %v661_v18 = vpop.f32.mrf.mxu2 }
 0x22c   : > { %v662_v19 = vadd.f32 %v661_v18, %v613_v17 }
 0x22e   : > { %v680_v20 = vmax.f32 %v662_v19, 0.0 }
 0x22f   : > { %v614_v21 = vpop.f32.mrf.mxu1 }
 0x230   : > { %696 = vst [vmem:[%s1306_s5 + $0x70] sm:$0xff] %v680_v20  ;;  %v615_v22 = vadd.f32 %v1300_v8, %v614_v21 }
 0x233   : > { %v663_v23 = vpop.f32.mrf.mxu2 }
 0x234   : > { %v664_v24 = vadd.f32 %v663_v23, %v615_v22 }
 0x236   : > { %v681_v25 = vmax.f32 %v664_v24, 0.0 }
 0x238   : > { %697 = vst [vmem:[%s1306_s5 + $0x78] sm:$0xff] %v681_v25 }
 0x239   : > { %980 = shalt.err (!%p977_p3)
}
 0x23a   : > { %s1017_s28 = smov 128   ;;  %s1018_s29 = smov 8  }
 0x23b   : > { %911 = dma.vmem_to_hbm [thread:$0]  (%p1082_p5), %s712_s10, 2048, %s714_s11, %s699_s19, %s1017_s28, %s1017_s28, %s1018_s29  }
 0x23c PF: > { %p917_p4 = scmp.ge.s32.totalorder %s1015_s18, 2  ;;  %s728_s30 = sand.u32 1, %s1003_s15  }
 0x23d   : > { %s729_s5 = scalar_lea.sflag [#allocation3], %s728_s30 }
 0x23e   : > { %p914_p7 = pnand %p917_p4, %p1086_p6 }
 0x240   : > { %p915_p8 = pneg %p914_p7 }
 0x242   : > { %998 = dma.done.wait (%p915_p8), %s729_s5, 2048  }
 0x243   : > { %1000 = vsyncadd (%p915_p8), %s729_s5, 4294965248  ;;  %p14_p9 = scmp.ge.s32.totalorder %s1069_s21, 4   ;;  %s1380_s15 = smov %s1007_s16 }
 0x244   : > { %s1381_s16 = smov %s1011_s17  ;;  %s1382_s17 = smov %s1080_s24 }
 0x245   : > { %s1383_s18 = smov %s1069_s21  ;;  %16 = sbr.rel (!%p14_p9) target bundleno = 3 (0x3), region = 71 }
 0x24a   :  { %735 = vsyncpa [#allocation3], 1 }
 0x24b   :  { %737 = vsyncpa [#allocation3 + $0x1], 1 }

</bundles_post_ra>
